<compile_context>
chip_gen: v7x
topology: tpu7x:2x2x1
jax: 0.10.0
libtpu: 0.0.40
codegen_flags: <defaults>
</compile_context>

<pallas_src>
import functools

import jax
import jax.numpy as jnp
from jax.experimental import pallas as pl
from jax.experimental.pallas import tpu as pltpu


def _round_up(x, m):
    return ((x + m - 1) // m) * m


def _cnn_kernel(x_ref, w_ref, b_ref, out_ref, *, l_out, kernel_size, time_chunk):
    """One batch-tile per grid step.

    x_ref:   (L_in, TB, C_pad)   bf16  conv-padded input, time leading
    w_ref:   (K, C_pad, O_pad)   bf16  per-tap weight matrices
    b_ref:   (1, O_pad)          f32   bias
    out_ref: (TB, O_pad)         f32   max-over-time conv output (bias included)
    """
    tb, o_pad = out_ref.shape
    c_pad = x_ref.shape[-1]

    def conv_chunk(t0, tc):
        # Conv outputs for times [t0, t0+tc): K shifted MXU matmuls, f32 accum,
        # then max over the chunk's time axis (leading axis -> pure VPU max).
        acc = jnp.zeros((tc * tb, o_pad), jnp.float32)
        for k in range(kernel_size):                         # static unroll, K small
            xs = x_ref[pl.ds(t0 + k, tc)]                    # (tc, TB, C_pad) offset load
            acc = acc + jnp.dot(xs.reshape(tc * tb, c_pad), w_ref[k],
                                preferred_element_type=jnp.float32)
        return jnp.max(acc.reshape(tc, tb, o_pad), axis=0)   # (TB, O_pad)

    n_full = l_out // time_chunk
    rem = l_out - n_full * time_chunk

    running = jnp.full((tb, o_pad), -jnp.inf, dtype=jnp.float32)
    if n_full > 0:
        def body(t, m):
            return jnp.maximum(m, conv_chunk(t * time_chunk, time_chunk))
        running = jax.lax.fori_loop(0, n_full, body, running, unroll=(n_full <= 8))
    if rem > 0:  # static tail chunk: exact size, no masking required
        running = jnp.maximum(running, conv_chunk(n_full * time_chunk, rem))

    # Bias after the max: max_t(y + b) == max_t(y) + b (b constant over time).
    out_ref[...] = running + b_ref[...]


def cnn_forward(x, weight, bias, *, padding=1, batch_tile=256, time_chunk=16,
                vmem_budget_bytes=20 * 1024 * 1024,
                vmem_limit_bytes=32 * 1024 * 1024):
    """x: (B, echar, L) f32; weight: (eword, echar, K); bias: (eword,) -> (B, eword) f32."""
    B, C, L = x.shape
    O, C2, K = weight.shape
    assert C2 == C
    L_in = L + 2 * padding
    L_out = L_in - K + 1
    assert L_out >= 1, "sequence too short for this kernel_size / padding"

    C_pad = _round_up(C, 128)                 # lane-dense contraction
    O_pad = _round_up(O, 128)                 # lane-dense output -> unmasked stores
    TC = max(1, min(time_chunk, L_out))       # time-chunk for the running max

    # Batch tile from a VMEM formula: double-buffered x/out tiles + weights +
    # in-kernel temporaries must fit the budget (conservative for v7x 64 MiB/TC).
    def step_bytes(tb):
        return (2 * L_in * tb * C_pad * 2         # x tile (double-buffered)
                + 2 * K * C_pad * O_pad * 2       # weight copies
                + 2 * tb * O_pad * 4              # output tile (double-buffered)
                + (TC + 2) * tb * O_pad * 4)      # chunk accumulator + running max

    TB = min(batch_tile, _round_up(B, 16))
    TB = max(16, TB - TB % 16)
    while TB > 16 and step_bytes(TB) > vmem_budget_bytes:
        TB -= 16
    # v7x has 2 TensorCores per chip: force >=2 grid steps when the batch allows.
    if _round_up(B, TB) // TB < 2 and _round_up(B, 16) >= 32:
        TB = max(16, _round_up(TB // 2, 16))
    B_pad = _round_up(B, TB)

    # Wrapper glue (single pass): cast to bf16 BEFORE padding; one merged pad
    # that also applies the conv's own zero padding on the (leading) time axis.
    xT = jnp.transpose(x.astype(jnp.bfloat16), (2, 0, 1))                # (L, B, C)
    xT = jnp.pad(xT, ((padding, padding), (0, B_pad - B), (0, C_pad - C)))

    # weight (O, C, K) -> per-tap matrices (K, C_pad, O_pad) with w[k][c, o].
    w = jnp.transpose(weight, (2, 1, 0))                                 # (K, C, O)
    w = jnp.pad(w, ((0, 0), (0, C_pad - C), (0, O_pad - O))).astype(jnp.bfloat16)
    b = jnp.pad(bias, (0, O_pad - O)).reshape(1, O_pad).astype(jnp.float32)

    kernel = functools.partial(_cnn_kernel, l_out=L_out, kernel_size=K, time_chunk=TC)
    out = pl.pallas_call(
        kernel,
        out_shape=jax.ShapeDtypeStruct((B_pad, O_pad), jnp.float32),
        grid_spec=pltpu.PrefetchScalarGridSpec(
            num_scalar_prefetch=0,
            grid=(B_pad // TB,),
            in_specs=[
                pl.BlockSpec((L_in, TB, C_pad), lambda i: (0, i, 0)),
                # Weight / bias are grid-invariant (constant index_map) so the
                # pipeline reuses their buffers across steps.
                # TODO(synk): pipeline_mode=pl.Buffered(1) here would drop the 2nd
                # buffer (~K*C_pad*O_pad*2 bytes) once confirmed supported.
                pl.BlockSpec((K, C_pad, O_pad), lambda i: (0, 0, 0)),
                pl.BlockSpec((1, O_pad), lambda i: (0, 0)),
            ],
            out_specs=pl.BlockSpec((TB, O_pad), lambda i: (i, 0)),
        ),
        compiler_params=pltpu.CompilerParams(
            dimension_semantics=("parallel",),
            # Explicit: above v5e's 16 MiB scoped default, within v7x's 64 MiB/TC.
            vmem_limit_bytes=vmem_limit_bytes,
        ),
    )(xT, w, b)
    return out[:B, :O]


def _reference(x, weight, bias, *, padding=1):
    # Pure-JAX reference using lax conv (NCL layout, same as PyTorch Conv1d).
    y = jax.lax.conv_general_dilated(
        x, weight,
        window_strides=(1,),
        padding=[(padding, padding)],
        dimension_numbers=("NCH", "OIH", "NCH"),
    ) + bias[None, :, None]
    return jnp.max(y, axis=2)


if __name__ == "__main__":
    # Small deterministic setup: batch=2, echar=4, seq_len=16, eword=32, K=5, pad=1.
    B, echar, L = 2, 4, 16
    eword, K, pad = 32, 5, 1

    key = jax.random.PRNGKey(0)
    kx, kw, kb = jax.random.split(key, 3)
    x = jax.random.normal(kx, (B, echar, L), dtype=jnp.float32)
    weight = jax.random.normal(kw, (eword, echar, K), dtype=jnp.float32) * 0.1
    bias = jax.random.normal(kb, (eword,), dtype=jnp.float32) * 0.1

    fwd = jax.jit(functools.partial(cnn_forward, padding=pad))
    out = jax.block_until_ready(fwd(x, weight, bias))

    # Reference on the same bf16-rounded inputs the kernel feeds the MXU.
    ref = _reference(x.astype(jnp.bfloat16).astype(jnp.float32),
                     weight.astype(jnp.bfloat16).astype(jnp.float32),
                     bias, padding=pad)
    assert out.shape == (B, eword)
    assert jnp.allclose(out, ref, atol=2e-3, rtol=2e-3), "mismatch vs reference"

    print("KERNEL_OK")
</pallas_src>

<mosaic_0001>
module attributes {stable_mosaic.version = 11 : i64} {
  func.func @_cnn_kernel(%arg0: i32, %arg1: memref<18x16x128xbf16, #tpu.memory_space<vmem>>, %arg2: memref<5x128x128xbf16, #tpu.memory_space<vmem>>, %arg3: memref<1x128xf32, #tpu.memory_space<vmem>>, %arg4: memref<16x128xf32, #tpu.memory_space<vmem>>) attributes {dimension_semantics = [#tpu.dimension_semantics<parallel>], iteration_bounds = array<i64: 1>, scalar_prefetch = 0 : i64, scratch_operands = 0 : i64, tpu.core_type = #tpu.core_type<tc>, window_params = [{transform_indices = @transform_0, window_bounds = array<i64: 18, 16, 128>}, {pipeline_mode = #tpu.pipeline_mode<synchronous>, transform_indices = @transform_1, window_bounds = array<i64: 5, 128, 128>}, {pipeline_mode = #tpu.pipeline_mode<synchronous>, transform_indices = @transform_2, window_bounds = array<i64: 1, 128>}, {transform_indices = @transform_3, window_bounds = array<i64: 16, 128>}]} {
    %cst = arith.constant 0xFF800000 : f32
    %0 = vector.broadcast %cst : f32 to vector<16x128xf32>
    %c0_i32 = arith.constant 0 : i32
    %c14_i32 = arith.constant 14 : i32
    %1 = arith.muli %c0_i32, %c14_i32 : i32
    %cst_0 = arith.constant 0.000000e+00 : f32
    %2 = vector.broadcast %cst_0 : f32 to vector<224x128xf32>
    %c0_i32_1 = arith.constant 0 : i32
    %3 = arith.addi %1, %c0_i32_1 : i32
    %4 = arith.index_cast %3 : i32 to index
    %c0 = arith.constant 0 : index
    %c0_2 = arith.constant 0 : index
    %5 = vector.load %arg1[%4, %c0, %c0_2] : memref<18x16x128xbf16, #tpu.memory_space<vmem>>, vector<14x16x128xbf16>
    %6 = vector.shape_cast %5 : vector<14x16x128xbf16> to vector<224x128xbf16>
    %c0_3 = arith.constant 0 : index
    %c0_4 = arith.constant 0 : index
    %c0_5 = arith.constant 0 : index
    %7 = vector.load %arg2[%c0_3, %c0_4, %c0_5] : memref<5x128x128xbf16, #tpu.memory_space<vmem>>, vector<1x128x128xbf16>
    %8 = vector.shape_cast %7 : vector<1x128x128xbf16> to vector<128x128xbf16>
    %cst_6 = arith.constant dense<0.000000e+00> : vector<224x128xf32>
    %9 = tpu.matmul %6, %8, %cst_6 {dimension_numbers = #tpu.dot_dimension_numbers<[1], [0], [0], [1], [0, 0, 1, 1], [], []>} : vector<224x128xbf16>, vector<128x128xbf16>, vector<224x128xf32> -> vector<224x128xf32>
    %10 = arith.addf %2, %9 : vector<224x128xf32>
    %c1_i32 = arith.constant 1 : i32
    %11 = arith.addi %1, %c1_i32 : i32
    %12 = arith.index_cast %11 : i32 to index
    %c0_7 = arith.constant 0 : index
    %c0_8 = arith.constant 0 : index
    %13 = vector.load %arg1[%12, %c0_7, %c0_8] : memref<18x16x128xbf16, #tpu.memory_space<vmem>>, vector<14x16x128xbf16>
    %14 = vector.shape_cast %13 : vector<14x16x128xbf16> to vector<224x128xbf16>
    %c1 = arith.constant 1 : index
    %c0_9 = arith.constant 0 : index
    %c0_10 = arith.constant 0 : index
    %15 = vector.load %arg2[%c1, %c0_9, %c0_10] : memref<5x128x128xbf16, #tpu.memory_space<vmem>>, vector<1x128x128xbf16>
    %16 = vector.shape_cast %15 : vector<1x128x128xbf16> to vector<128x128xbf16>
    %cst_11 = arith.constant dense<0.000000e+00> : vector<224x128xf32>
    %17 = tpu.matmul %14, %16, %cst_11 {dimension_numbers = #tpu.dot_dimension_numbers<[1], [0], [0], [1], [0, 0, 1, 1], [], []>} : vector<224x128xbf16>, vector<128x128xbf16>, vector<224x128xf32> -> vector<224x128xf32>
    %18 = arith.addf %10, %17 : vector<224x128xf32>
    %c2_i32 = arith.constant 2 : i32
    %19 = arith.addi %1, %c2_i32 : i32
    %20 = arith.index_cast %19 : i32 to index
    %c0_12 = arith.constant 0 : index
    %c0_13 = arith.constant 0 : index
    %21 = vector.load %arg1[%20, %c0_12, %c0_13] : memref<18x16x128xbf16, #tpu.memory_space<vmem>>, vector<14x16x128xbf16>
    %22 = vector.shape_cast %21 : vector<14x16x128xbf16> to vector<224x128xbf16>
    %c2 = arith.constant 2 : index
    %c0_14 = arith.constant 0 : index
    %c0_15 = arith.constant 0 : index
    %23 = vector.load %arg2[%c2, %c0_14, %c0_15] : memref<5x128x128xbf16, #tpu.memory_space<vmem>>, vector<1x128x128xbf16>
    %24 = vector.shape_cast %23 : vector<1x128x128xbf16> to vector<128x128xbf16>
    %cst_16 = arith.constant dense<0.000000e+00> : vector<224x128xf32>
    %25 = tpu.matmul %22, %24, %cst_16 {dimension_numbers = #tpu.dot_dimension_numbers<[1], [0], [0], [1], [0, 0, 1, 1], [], []>} : vector<224x128xbf16>, vector<128x128xbf16>, vector<224x128xf32> -> vector<224x128xf32>
    %26 = arith.addf %18, %25 : vector<224x128xf32>
    %c3_i32 = arith.constant 3 : i32
    %27 = arith.addi %1, %c3_i32 : i32
    %28 = arith.index_cast %27 : i32 to index
    %c0_17 = arith.constant 0 : index
    %c0_18 = arith.constant 0 : index
    %29 = vector.load %arg1[%28, %c0_17, %c0_18] : memref<18x16x128xbf16, #tpu.memory_space<vmem>>, vector<14x16x128xbf16>
    %30 = vector.shape_cast %29 : vector<14x16x128xbf16> to vector<224x128xbf16>
    %c3 = arith.constant 3 : index
    %c0_19 = arith.constant 0 : index
    %c0_20 = arith.constant 0 : index
    %31 = vector.load %arg2[%c3, %c0_19, %c0_20] : memref<5x128x128xbf16, #tpu.memory_space<vmem>>, vector<1x128x128xbf16>
    %32 = vector.shape_cast %31 : vector<1x128x128xbf16> to vector<128x128xbf16>
    %cst_21 = arith.constant dense<0.000000e+00> : vector<224x128xf32>
    %33 = tpu.matmul %30, %32, %cst_21 {dimension_numbers = #tpu.dot_dimension_numbers<[1], [0], [0], [1], [0, 0, 1, 1], [], []>} : vector<224x128xbf16>, vector<128x128xbf16>, vector<224x128xf32> -> vector<224x128xf32>
    %34 = arith.addf %26, %33 : vector<224x128xf32>
    %c4_i32 = arith.constant 4 : i32
    %35 = arith.addi %1, %c4_i32 : i32
    %36 = arith.index_cast %35 : i32 to index
    %c0_22 = arith.constant 0 : index
    %c0_23 = arith.constant 0 : index
    %37 = vector.load %arg1[%36, %c0_22, %c0_23] : memref<18x16x128xbf16, #tpu.memory_space<vmem>>, vector<14x16x128xbf16>
    %38 = vector.shape_cast %37 : vector<14x16x128xbf16> to vector<224x128xbf16>
    %c4 = arith.constant 4 : index
    %c0_24 = arith.constant 0 : index
    %c0_25 = arith.constant 0 : index
    %39 = vector.load %arg2[%c4, %c0_24, %c0_25] : memref<5x128x128xbf16, #tpu.memory_space<vmem>>, vector<1x128x128xbf16>
    %40 = vector.shape_cast %39 : vector<1x128x128xbf16> to vector<128x128xbf16>
    %cst_26 = arith.constant dense<0.000000e+00> : vector<224x128xf32>
    %41 = tpu.matmul %38, %40, %cst_26 {dimension_numbers = #tpu.dot_dimension_numbers<[1], [0], [0], [1], [0, 0, 1, 1], [], []>} : vector<224x128xbf16>, vector<128x128xbf16>, vector<224x128xf32> -> vector<224x128xf32>
    %42 = arith.addf %34, %41 : vector<224x128xf32>
    %43 = vector.shape_cast %42 : vector<224x128xf32> to vector<14x16x128xf32>
    %cst_27 = arith.constant dense<0xFF800000> : vector<16x128xf32>
    %44 = vector.multi_reduction <maximumf>, %43, %cst_27 [0] : vector<14x16x128xf32> to vector<16x128xf32>
    %45 = arith.maximumf %0, %44 : vector<16x128xf32>
    %c1_i32_28 = arith.constant 1 : i32
    %c0_29 = arith.constant 0 : index
    %c0_30 = arith.constant 0 : index
    %46 = vector.load %arg3[%c0_29, %c0_30] : memref<1x128xf32, #tpu.memory_space<vmem>>, vector<1x128xf32>
    %47 = vector.broadcast %46 : vector<1x128xf32> to vector<16x128xf32>
    %48 = arith.addf %45, %47 : vector<16x128xf32>
    %c0_31 = arith.constant 0 : index
    %c0_32 = arith.constant 0 : index
    %49 = vector.load %arg4[%c0_31, %c0_32] : memref<16x128xf32, #tpu.memory_space<vmem>>, vector<16x128xf32>
    tpu.vector_store %arg4[%c0_31, %c0_32], %48 {strides = array<i32>} : memref<16x128xf32, #tpu.memory_space<vmem>>, vector<16x128xf32>,
    return
  }
  func.func @transform_0(%arg0: i32) -> (i32, i32, i32) {
    %c0_i32 = arith.constant 0 : i32
    %c0_i32_0 = arith.constant 0 : i32
    %c0_i32_1 = arith.constant 0 : i32
    return %c0_i32, %arg0, %c0_i32_0 : i32, i32, i32
  }
  func.func @transform_1(%arg0: i32) -> (i32, i32, i32) {
    %c0_i32 = arith.constant 0 : i32
    %c0_i32_0 = arith.constant 0 : i32
    %c0_i32_1 = arith.constant 0 : i32
    %c0_i32_2 = arith.constant 0 : i32
    return %c0_i32, %c0_i32_0, %c0_i32_1 : i32, i32, i32
  }
  func.func @transform_2(%arg0: i32) -> (i32, i32) {
    %c0_i32 = arith.constant 0 : i32
    %c0_i32_0 = arith.constant 0 : i32
    %c0_i32_1 = arith.constant 0 : i32
    return %c0_i32, %c0_i32_0 : i32, i32
  }
  func.func @transform_3(%arg0: i32) -> (i32, i32) {
    %c0_i32 = arith.constant 0 : i32
    %c0_i32_0 = arith.constant 0 : i32
    return %arg0, %c0_i32 : i32, i32
  }
}

</mosaic_0001>

<bundles_post_ra>
// kernel: cnn_forward.1
= control target key start
LH: loop header
LB: loop body
LE: loop exit
PB: predicated region body
PF: predicated region fallthrough
CT: control target
= control target key end

     0   :  { %s3015_s1 = inlined_call_operand.vmem [shape: bf16[5,128,128], index: 1, kind: input, shape index: {}]   ;;  %s3016_s0 = inlined_call_operand.vmem [shape: bf16[18,16,128], index: 0, kind: input, shape index: {}]   ;;  %s3017_s2 = inlined_call_operand.vmem [shape: f32[1,128], index: 2, kind: input, shape index: {}]   ;;  %s3018_s3 = inlined_call_operand.vmem [shape: f32[16,128], index: 3, kind: output, shape index: {}]  }
   0x1   :  { %v2498_v0 = vld [vmem:[%s3015_s1 + $0x40] sm:$0xff]   ;;  %v2500_v2 = vld [vmem:[%s3015_s1 + $0x48] sm:$0xff]   ;;  %v2502_v4 = vld [vmem:[%s3015_s1 + $0x50] sm:$0xff]  }
   0x2   :  { %v2634_v1 = vld [vmem:[%s3015_s1 + $0x80] sm:$0xff]   ;;  %2150 = vmatprep.subr.bf16.mxu1 %v2498_v0  ;;  %v2643_v3 = vld [vmem:[%s3015_s1 + $0x88] sm:$0xff]   ;;  %v2653_v5 = vld [vmem:[%s3015_s1 + $0x90] sm:$0xff]  }
   0x3   :  { %2238 = vmatprep.subr.bf16.mxu0 %v2634_v1  ;;  %2151 = vmatpush3.bf16.msra.mxu1 %v2498_v0  ;;  %v2504_v6 = vld [vmem:[%s3015_s1 + $0x58] sm:$0xff]   ;;  %v2506_v8 = vld [vmem:[%s3015_s1 + $0x60] sm:$0xff]   ;;  %v2508_v10 = vld [vmem:[%s3015_s1 + $0x68] sm:$0xff]  }
   0x4   :  { %2239 = vmatpush3.bf16.msra.mxu0 %v2634_v1  ;;  %2152 = vmatprep.subr.bf16.mxu1 %v2500_v2  ;;  %v2663_v7 = vld [vmem:[%s3015_s1 + $0x98] sm:$0xff]   ;;  %v2673_v9 = vld [vmem:[%s3015_s1 + $0xa0] sm:$0xff]   ;;  %v2681_v11 = vld [vmem:[%s3015_s1 + $0xa8] sm:$0xff]  }
   0x5   :  { %2240 = vmatprep.subr.bf16.mxu0 %v2643_v3  ;;  %v2514_v12 = vld [vmem:[%s3016_s0 + $0x8] sm:$0xff]   ;;  %v2515_v13 = vld [vmem:[%s3016_s0 + $0x10] sm:$0xff]   ;;  %v2512_v16 = vld [vmem:[%s3015_s1 + $0x78] sm:$0xff]  }
   0x6   :  { %2166 = vmatprep.mubr.bf16.mxu1 %v2514_v12  ;;  %2254 = vmatprep.mubr.bf16.mxu0 %v2515_v13  ;;  %v2510_v14 = vld [vmem:[%s3015_s1 + $0x70] sm:$0xff]   ;;  %v2709_v17 = vld [vmem:[%s3015_s1 + $0xb8] sm:$0xff]   ;;  %v2523_v19 = vld [vmem:[%s3015_s1] sm:$0xff]  }
   0x7   :  { %2153 = vmatpush3.bf16.msra.mxu1 %v2500_v2  ;;  %v2699_v15 = vld [vmem:[%s3015_s1 + $0xb0] sm:$0xff]   ;;  %v2518_v20 = vld [vmem:[%s3015_s1 + $0xc0] sm:$0xff]   ;;  %v2517_v21 = vld [vmem:[%s3016_s0 + $0x18] sm:$0xff]  }
   0x8   :  { %2241 = vmatpush3.bf16.msra.mxu0 %v2643_v3  ;;  %2154 = vmatprep.subr.bf16.mxu1 %v2502_v4  ;;  %v2516_v18 = vld [vmem:[%s3016_s0 + $0x10] sm:$0xff]   ;;  %v2520_v22 = vld [vmem:[%s3016_s0 + $0x18] sm:$0xff]   ;;  %v2521_v23 = vld [vmem:[%s3016_s0 + $0x20] sm:$0xff]  }
   0x9   :  { %2242 = vmatprep.subr.bf16.mxu0 %v2653_v5  ;;  %v2519_v24 = vld [vmem:[%s3015_s1 + $0xc8] sm:$0xff]   ;;  %v2522_v26 = vld [vmem:[%s3016_s0 + $0x20] sm:$0xff]   ;;  %v2525_v28 = vld [vmem:[%s3015_s1 + $0xd0] sm:$0xff]  }
   0xa   :  { %v2528_v25 = vld [vmem:[%s3015_s1 + $0x8] sm:$0xff]   ;;  %v2534_v29 = vld [vmem:[%s3015_s1 + $0x10] sm:$0xff]   ;;  %v2526_v32 = vld [vmem:[%s3015_s1 + $0xd8] sm:$0xff]  }
   0xb   :  { %2155 = vmatpush3.bf16.msra.mxu1 %v2502_v4  ;;  %v2524_v27 = vld [vmem:[%s3016_s0 + $0x28] sm:$0xff]   ;;  %v2529_v31 = vld [vmem:[%s3016_s0 + $0x30] sm:$0xff]   ;;  %v2541_v33 = vld [vmem:[%s3015_s1 + $0x18] sm:$0xff]  }
   0xc   :  { %2243 = vmatpush3.bf16.msra.mxu0 %v2653_v5  ;;  %2156 = vmatprep.subr.bf16.mxu1 %v2504_v6  ;;  %v2527_v30 = vld [vmem:[%s3016_s0 + $0x28] sm:$0xff]   ;;  %v2530_v34 = vld [vmem:[%s3016_s0 + $0x30] sm:$0xff]   ;;  %v2532_v35 = vld [vmem:[%s3015_s1 + $0xe0] sm:$0xff]  }
   0xd   :  { %2244 = vmatprep.subr.bf16.mxu0 %v2663_v7  ;;  %v2531_v36 = vld [vmem:[%s3016_s0 + $0x38] sm:$0xff]   ;;  %v2533_v37 = vld [vmem:[%s3015_s1 + $0xe8] sm:$0xff]   ;;  %v2536_v39 = vld [vmem:[%s3016_s0 + $0x40] sm:$0xff]  }
   0xe   :  { %v2535_v38 = vld [vmem:[%s3016_s0 + $0x38] sm:$0xff]   ;;  %v2547_v40 = vld [vmem:[%s3015_s1 + $0x20] sm:$0xff]   ;;  %v2538_v42 = vld [vmem:[%s3016_s0 + $0x48] sm:$0xff]  }
   0xf   :  { %2157 = vmatpush3.bf16.msra.mxu1 %v2504_v6  ;;  %v2537_v41 = vld [vmem:[%s3016_s0 + $0x40] sm:$0xff]   ;;  %v2539_v43 = vld [vmem:[%s3015_s1 + $0xf0] sm:$0xff]   ;;  %v2542_v44 = vld [vmem:[%s3016_s0 + $0x48] sm:$0xff]  }
  0x10   :  { %2245 = vmatpush3.bf16.msra.mxu0 %v2663_v7  ;;  %2158 = vmatprep.subr.bf16.mxu1 %v2506_v8  ;;  %v2553_v45 = vld [vmem:[%s3015_s1 + $0x28] sm:$0xff]   ;;  %v2543_v46 = vld [vmem:[%s3016_s0 + $0x18] sm:$0xff]   ;;  %v2544_v48 = vld [vmem:[%s3016_s0 + $0x50] sm:$0xff]  }
  0x11   :  { %2246 = vmatprep.subr.bf16.mxu0 %v2673_v9  ;;  %v2540_v47 = vld [vmem:[%s3015_s1 + $0xf8] sm:$0xff]   ;;  %v2558_v49 = vld [vmem:[%s3015_s1 + $0x30] sm:$0xff]   ;;  %v2545_v50 = vld [vmem:[%s3016_s0 + $0x20] sm:$0xff]  }
  0x12   :  { %v2546_v51 = vld [vmem:[%s3015_s1 + $0x100] sm:$0xff]   ;;  %v2560_v52 = vld [vmem:[%s3015_s1 + $0x38] sm:$0xff]   ;;  %v2549_v54 = vld [vmem:[%s3016_s0 + $0x28] sm:$0xff]  }
  0x13   :  { %2159 = vmatpush3.bf16.msra.mxu1 %v2506_v8  ;;  %v2548_v53 = vld [vmem:[%s3016_s0 + $0x58] sm:$0xff]   ;;  %v2550_v55 = vld [vmem:[%s3015_s1 + $0x108] sm:$0xff]   ;;  %v2551_v56 = vld [vmem:[%s3016_s0 + $0x60] sm:$0xff]  }
  0x14   :  { %2247 = vmatpush3.bf16.msra.mxu0 %v2673_v9  ;;  %2160 = vmatprep.subr.bf16.mxu1 %v2508_v10  ;;  %v2554_v57 = vld [vmem:[%s3015_s1 + $0x110] sm:$0xff]   ;;  %v2555_v59 = vld [vmem:[%s3016_s0 + $0x68] sm:$0xff]   ;;  %v2556_v60 = vld [vmem:[%s3016_s0 + $0x38] sm:$0xff]  }
  0x15   :  { %2248 = vmatprep.subr.bf16.mxu0 %v2681_v11  ;;  %v2552_v58 = vld [vmem:[%s3016_s0 + $0x30] sm:$0xff]   ;;  %v2561_v61 = vld [vmem:[%s3015_s1 + $0x118] sm:$0xff]   ;;  %v2566_v63 = vld [vmem:[%s3015_s1 + $0x120] sm:$0xff]  }
  0x16   :  { %v2557_v62 = vld [vmem:[%s3016_s0 + $0x70] sm:$0xff]   ;;  %v2559_v0 = vld [vmem:[%s3016_s0 + $0x40] sm:$0xff]   ;;  %v2563_v4 = vld [vmem:[%s3016_s0 + $0x48] sm:$0xff]  }
  0x17   :  { %2161 = vmatpush3.bf16.msra.mxu1 %v2508_v10  ;;  %v2562_v2 = vld [vmem:[%s3016_s0] sm:$0xff]   ;;  %v2571_v6 = vld [vmem:[%s3015_s1 + $0x128] sm:$0xff]   ;;  %v2576_v10 = vld [vmem:[%s3015_s1 + $0x130] sm:$0xff]  }
  0x18   :  { %2249 = vmatpush3.bf16.msra.mxu0 %v2681_v11  ;;  %2162 = vmatprep.subr.bf16.mxu1 %v2510_v14  ;;  %v2564_v8 = vld [vmem:[%s3016_s0 + $0x8] sm:$0xff]   ;;  %v2565_v12 = vld [vmem:[%s3016_s0 + $0x50] sm:$0xff]  }
  0x19   :  { %2250 = vmatprep.subr.bf16.mxu0 %v2699_v15  ;;  %v2567_v13 = vld [vmem:[%s3016_s0 + $0x10] sm:$0xff]  }
  0x1b   :  { %2163 = vmatpush3.bf16.msra.mxu1 %v2510_v14  ;;  %v2568_v14 = vld [vmem:[%s3016_s0 + $0x58] sm:$0xff]  }
  0x1c   :  { %2251 = vmatpush3.bf16.msra.mxu0 %v2699_v15  ;;  %2164 = vmatprep.subr.bf16.mxu1 %v2512_v16 }
  0x1d   :  { %2252 = vmatprep.subr.bf16.mxu0 %v2709_v17 }
  0x1f   :  { %2165 = vmatpush3.bf16.msra.mxu1 %v2512_v16  ;;  %v2581_v16 = vld [vmem:[%s3015_s1 + $0x138] sm:$0xff]  }
  0x20   :  { %2253 = vmatpush3.bf16.msra.mxu0 %v2709_v17  ;;  %2194 = vmatprep.subr.bf16.mxu1 %v2523_v19 }
  0x21   :  { %2282 = vmatprep.subr.bf16.mxu0 %v2518_v20 }
  0x22   :  { %2167 = vmatmul.mubr.bf16.vlgmr.msra.gmra.mrb[0].mxu1 %v2516_v18  ;;  %v2569_v18 = vld [vmem:[%s3016_s0 + $0x18] sm:$0xff]  }
  0x23   :  { %2255 = vmatmul.mubr.bf16.vlgmr.msra.gmra.mrb[0].mxu0 %v2517_v21  ;;  %2170 = vmatprep.mubr.bf16.mxu1 %v2520_v22  ;;  %v2574_v21 = vld [vmem:[%s3016_s0 + $0x28] sm:$0xff]   ;;  %v2575_v22 = vld [vmem:[%s3016_s0 + $0x70] sm:$0xff]  }
  0x24   :  { %2283 = vmatpush3.bf16.msra.mxu0 %v2518_v20  ;;  %2258 = vmatprep.mubr.bf16.mxu0 %v2521_v23  ;;  %v2572_v20 = vld [vmem:[%s3016_s0 + $0x20] sm:$0xff]   ;;  %v2578_v23 = vld [vmem:[%s3016_s0 + $0x78] sm:$0xff]  }
  0x25   :  { %2284 = vmatprep.subr.bf16.mxu0 %v2519_v24  ;;  %2195 = vmatpush3.bf16.msra.mxu1 %v2523_v19  ;;  %v2570_v19 = vld [vmem:[%s3016_s0 + $0x60] sm:$0xff]  }
  0x26   :  { %2196 = vmatprep.subr.bf16.mxu1 %v2528_v25 }
  0x28   :  { %2285 = vmatpush3.bf16.msra.mxu0 %v2519_v24  ;;  %v2580_v24 = vld [vmem:[%s3016_s0 + $0x80] sm:$0xff]  }
  0x29   :  { %2286 = vmatprep.subr.bf16.mxu0 %v2525_v28  ;;  %2197 = vmatpush3.bf16.msra.mxu1 %v2528_v25  ;;  %v2583_v25 = vld [vmem:[%s3016_s0 + $0x20] sm:$0xff]  }
  0x2a   :  { %2171 = vmatmul.mubr.bf16.gmra.mrb[4].mxu1 %v2522_v26  ;;  %2198 = vmatprep.subr.bf16.mxu1 %v2534_v29  ;;  %v2585_v26 = vld [vmem:[%s3016_s0 + $0x28] sm:$0xff]  }
  0x2b   :  { %2259 = vmatmul.mubr.bf16.gmra.mrb[4].mxu0 %v2524_v27  ;;  %2174 = vmatprep.mubr.bf16.mxu1 %v2527_v30  ;;  %v2587_v27 = vld [vmem:[%s3016_s0 + $0x30] sm:$0xff]   ;;  %v2592_v30 = vld [vmem:[%s3016_s0 + $0x68] sm:$0xff]  }
  0x2c   :  { %2287 = vmatpush3.bf16.msra.mxu0 %v2525_v28  ;;  %2262 = vmatprep.mubr.bf16.mxu0 %v2529_v31  ;;  %v2589_v28 = vld [vmem:[%s3016_s0 + $0x38] sm:$0xff]   ;;  %v2593_v31 = vld [vmem:[%s3016_s0 + $0x48] sm:$0xff]  }
  0x2d   :  { %2288 = vmatprep.subr.bf16.mxu0 %v2526_v32  ;;  %2199 = vmatpush3.bf16.msra.mxu1 %v2534_v29  ;;  %v2590_v29 = vld [vmem:[%s3016_s0 + $0x60] sm:$0xff]  }
  0x2e   :  { %2200 = vmatprep.subr.bf16.mxu1 %v2541_v33 }
  0x30   :  { %2289 = vmatpush3.bf16.msra.mxu0 %v2526_v32  ;;  %v2594_v32 = vld [vmem:[%s3016_s0 + $0x50] sm:$0xff]  }
  0x31   :  { %2290 = vmatprep.subr.bf16.mxu0 %v2532_v35  ;;  %2201 = vmatpush3.bf16.msra.mxu1 %v2541_v33  ;;  %v2595_v33 = vld [vmem:[%s3016_s0 + $0x50] sm:$0xff]  }
  0x32   :  { %2175 = vmatmul.mubr.bf16.gmra.mrb[8].mxu1 %v2530_v34  ;;  %2202 = vmatprep.subr.bf16.mxu1 %v2547_v40  ;;  %v2596_v34 = vld [vmem:[%s3016_s0 + $0x58] sm:$0xff]  }
  0x33   :  { %2263 = vmatmul.mubr.bf16.gmra.mrb[8].mxu0 %v2531_v36  ;;  %2178 = vmatprep.mubr.bf16.mxu1 %v2535_v38  ;;  %v2598_v36 = vld [vmem:[%s3016_s0 + $0x60] sm:$0xff]   ;;  %v2600_v38 = vld [vmem:[%s3016_s0 + $0x68] sm:$0xff]  }
  0x34   :  { %2291 = vmatpush3.bf16.msra.mxu0 %v2532_v35  ;;  %2266 = vmatprep.mubr.bf16.mxu0 %v2536_v39  ;;  %v2597_v35 = vld [vmem:[%s3016_s0 + $0x58] sm:$0xff]   ;;  %v2601_v39 = vld [vmem:[%s3016_s0 + $0x68] sm:$0xff]  }
  0x35   :  { %2292 = vmatprep.subr.bf16.mxu0 %v2533_v37  ;;  %2203 = vmatpush3.bf16.msra.mxu1 %v2547_v40  ;;  %v2602_v40 = vld [vmem:[%s3016_s0 + $0x70] sm:$0xff]  }
  0x36   :  { %2204 = vmatprep.subr.bf16.mxu1 %v2553_v45 }
  0x38   :  { %2293 = vmatpush3.bf16.msra.mxu0 %v2533_v37  ;;  %v2599_v37 = vld [vmem:[%s3016_s0 + $0x60] sm:$0xff]  }
  0x39   :  { %2294 = vmatprep.subr.bf16.mxu0 %v2539_v43  ;;  %2205 = vmatpush3.bf16.msra.mxu1 %v2553_v45  ;;  %v2607_v45 = vld [vmem:[%s3016_s0 + $0x88] sm:$0xff]  }
  0x3a   :  { %2179 = vmatmul.mubr.bf16.gmra.mrb[12].mxu1 %v2537_v41  ;;  %2206 = vmatprep.subr.bf16.mxu1 %v2558_v49  ;;  %v2603_v41 = vld [vmem:[%s3016_s0 + $0x70] sm:$0xff]  }
  0x3b   :  { %2267 = vmatmul.mubr.bf16.gmra.mrb[12].mxu0 %v2538_v42  ;;  %2182 = vmatprep.mubr.bf16.mxu1 %v2542_v44  ;;  %v2604_v42 = vld [vmem:[%s3016_s0 + $0x78] sm:$0xff]   ;;  %v2606_v44 = vld [vmem:[%s3016_s0 + $0x80] sm:$0xff]  }
  0x3c   :  { %2295 = vmatpush3.bf16.msra.mxu0 %v2539_v43  ;;  %2298 = vmatprep.mubr.bf16.mxu0 %v2543_v46  ;;  %v2605_v43 = vld [vmem:[%s3016_s0 + $0x78] sm:$0xff]  }
  0x3d   :  { %2296 = vmatprep.subr.bf16.mxu0 %v2540_v47  ;;  %2207 = vmatpush3.bf16.msra.mxu1 %v2558_v49 }
  0x3e   :  { %2208 = vmatprep.subr.bf16.mxu1 %v2560_v52 }
  0x40   :  { %2297 = vmatpush3.bf16.msra.mxu0 %v2540_v47 }
  0x41   :  { %2326 = vmatprep.subr.bf16.mxu0 %v2546_v51  ;;  %2209 = vmatpush3.bf16.msra.mxu1 %v2560_v52 }
  0x42   :  { %2183 = vmatmul.mubr.bf16.gmra.mrb[16].mxu1 %v2544_v48  ;;  %2370 = vmatprep.subr.bf16.mxu1 %v2634_v1 }
  0x43   :  { %2299 = vmatmul.mubr.bf16.vlgmr.msra.gmra.mrb[0].mxu0 %v2545_v50  ;;  %2186 = vmatprep.mubr.bf16.mxu1 %v2548_v53 }
  0x44   :  { %2327 = vmatpush3.bf16.msra.mxu0 %v2546_v51  ;;  %2302 = vmatprep.mubr.bf16.mxu0 %v2549_v54 }
  0x45   :  { %2328 = vmatprep.subr.bf16.mxu0 %v2550_v55 }
  0x48   :  { %2329 = vmatpush3.bf16.msra.mxu0 %v2550_v55 }
  0x49   :  { %2330 = vmatprep.subr.bf16.mxu0 %v2554_v57 }
  0x4a   :  { %2187 = vmatmul.mubr.bf16.gmra.mrb[20].mxu1 %v2551_v56 }
  0x4b   :  { %2303 = vmatmul.mubr.bf16.gmra.mrb[4].mxu0 %v2552_v58  ;;  %2190 = vmatprep.mubr.bf16.mxu1 %v2555_v59 }
  0x4c   :  { %2306 = vmatprep.mubr.bf16.mxu0 %v2556_v60  ;;  %2331 = vmatpush3.bf16.msra.mxu0 %v2554_v57 }
  0x4d   :  { %2332 = vmatprep.subr.bf16.mxu0 %v2561_v61 }
  0x50   :  { %2333 = vmatpush3.bf16.msra.mxu0 %v2561_v61 }
  0x51   :  { %2334 = vmatprep.subr.bf16.mxu0 %v2566_v63 }
  0x52   :  { %2191 = vmatmul.mubr.bf16.gmra.mrb[24].mxu1 %v2557_v62 }
  0x53   :  { %2307 = vmatmul.mubr.bf16.gmra.mrb[8].mxu0 %v2559_v0  ;;  %2210 = vmatprep.mubr.bf16.mxu1 %v2562_v2 }
  0x54   :  { %2310 = vmatprep.mubr.bf16.mxu0 %v2563_v4  ;;  %2335 = vmatpush3.bf16.msra.mxu0 %v2566_v63 }
  0x55   :  { %2336 = vmatprep.subr.bf16.mxu0 %v2571_v6 }
  0x58   :  { %2337 = vmatpush3.bf16.msra.mxu0 %v2571_v6 }
  0x59   :  { %2338 = vmatprep.subr.bf16.mxu0 %v2576_v10 }
  0x5a   :  { %2211 = vmatmul.mubr.bf16.vlgmr.msra.gmra.mrb[0].mxu1 %v2564_v8 }
  0x5b   :  { %2311 = vmatmul.mubr.bf16.gmra.mrb[12].mxu0 %v2565_v12  ;;  %2214 = vmatprep.mubr.bf16.mxu1 %v2567_v13 }
  0x5c   :  { %2314 = vmatprep.mubr.bf16.mxu0 %v2568_v14  ;;  %2378 = vmatpush3.bf16.msra.mxu1 %v2634_v1  ;;  %v2573_v1 = vld [vmem:[%s3016_s0 + $0x68] sm:$0xff]  }
  0x5d   :  { %2371 = vmatprep.subr.bf16.mxu1 %v2643_v3  ;;  %2339 = vmatpush3.bf16.msra.mxu0 %v2576_v10 }
  0x5e   :  { %2340 = vmatprep.subr.bf16.mxu0 %v2581_v16 }
  0x60   :  { %2379 = vmatpush3.bf16.msra.mxu1 %v2643_v3  ;;  %v2577_v3 = vld [vmem:[%s3016_s0 + $0x30] sm:$0xff]  }
  0x61   :  { %2372 = vmatprep.subr.bf16.mxu1 %v2653_v5  ;;  %2341 = vmatpush3.bf16.msra.mxu0 %v2581_v16 }
  0x62   :  { %2215 = vmatmul.mubr.bf16.gmra.mrb[4].mxu1 %v2569_v18 }
  0x63   :  { %2315 = vmatmul.mubr.bf16.gmra.mrb[16].mxu0 %v2570_v19  ;;  %2218 = vmatprep.mubr.bf16.mxu1 %v2572_v20 }
  0x64   :  { %2318 = vmatprep.mubr.bf16.mxu0 %v2573_v1  ;;  %2380 = vmatpush3.bf16.msra.mxu1 %v2653_v5  ;;  %v2579_v5 = vld [vmem:[%s3016_s0 + $0x38] sm:$0xff]  }
  0x65   :  { %2373 = vmatprep.subr.bf16.mxu1 %v2663_v7 }
  0x68   :  { %2381 = vmatpush3.bf16.msra.mxu1 %v2663_v7  ;;  %v2582_v7 = vld [vmem:[%s3016_s0 + $0x40] sm:$0xff]  }
  0x69   :  { %2374 = vmatprep.subr.bf16.mxu1 %v2673_v9 }
  0x6a   :  { %2219 = vmatmul.mubr.bf16.gmra.mrb[8].mxu1 %v2574_v21 }
  0x6b   :  { %2319 = vmatmul.mubr.bf16.gmra.mrb[20].mxu0 %v2575_v22  ;;  %2222 = vmatprep.mubr.bf16.mxu1 %v2577_v3 }
  0x6c   :  { %2322 = vmatprep.mubr.bf16.mxu0 %v2578_v23  ;;  %2382 = vmatpush3.bf16.msra.mxu1 %v2673_v9  ;;  %v2584_v9 = vld [vmem:[%s3016_s0 + $0x48] sm:$0xff]  }
  0x6d   :  { %2375 = vmatprep.subr.bf16.mxu1 %v2681_v11 }
  0x70   :  { %2383 = vmatpush3.bf16.msra.mxu1 %v2681_v11  ;;  %v2586_v11 = vld [vmem:[%s3016_s0 + $0x50] sm:$0xff]  }
  0x71   :  { %2376 = vmatprep.subr.bf16.mxu1 %v2699_v15 }
  0x72   :  { %2223 = vmatmul.mubr.bf16.gmra.mrb[12].mxu1 %v2579_v5 }
  0x73   :  { %2323 = vmatmul.mubr.bf16.gmra.mrb[24].mxu0 %v2580_v24  ;;  %2226 = vmatprep.mubr.bf16.mxu1 %v2582_v7 }
  0x74   :  { %2342 = vmatprep.mubr.bf16.mxu0 %v2583_v25  ;;  %2384 = vmatpush3.bf16.msra.mxu1 %v2699_v15  ;;  %v2588_v15 = vld [vmem:[%s3016_s0 + $0x58] sm:$0xff]  }
  0x75   :  { %2377 = vmatprep.subr.bf16.mxu1 %v2709_v17 }
  0x78   :  { %2385 = vmatpush3.bf16.msra.mxu1 %v2709_v17  ;;  %v2591_v17 = vld [vmem:[%s3016_s0 + $0x40] sm:$0xff]  }
  0x7a   :  { %2227 = vmatmul.mubr.bf16.gmra.mrb[16].mxu1 %v2584_v9 }
  0x7b   :  { %2343 = vmatmul.mubr.bf16.vlgmr.msra.gmra.mrb[0].mxu0 %v2585_v26  ;;  %2230 = vmatprep.mubr.bf16.mxu1 %v2586_v11 }
  0x7c   :  { %2346 = vmatprep.mubr.bf16.mxu0 %v2587_v27 }
  0x82   :  { %2231 = vmatmul.mubr.bf16.gmra.mrb[20].mxu1 %v2588_v15 }
  0x83   :  { %2347 = vmatmul.mubr.bf16.gmra.mrb[4].mxu0 %v2589_v28  ;;  %2234 = vmatprep.mubr.bf16.mxu1 %v2590_v29 }
  0x84   :  { %2350 = vmatprep.mubr.bf16.mxu0 %v2591_v17 }
  0x8a   :  { %2235 = vmatmul.mubr.bf16.gmra.mrb[24].mxu1 %v2592_v30 }
  0x8b   :  { %2351 = vmatmul.mubr.bf16.gmra.mrb[8].mxu0 %v2593_v31  ;;  %2270 = vmatprep.mubr.bf16.mxu1 %v2594_v32 }
  0x8c   :  { %2354 = vmatprep.mubr.bf16.mxu0 %v2595_v33 }
  0x92   :  { %2271 = vmatmul.mubr.bf16.vlgmr.msra.gmra.mrb[16].mxu1 %v2596_v34 }
  0x93   :  { %2355 = vmatmul.mubr.bf16.gmra.mrb[12].mxu0 %v2597_v35  ;;  %2274 = vmatprep.mubr.bf16.mxu1 %v2598_v36 }
  0x94   :  { %2358 = vmatprep.mubr.bf16.mxu0 %v2599_v37 }
  0x9a   :  { %2275 = vmatmul.mubr.bf16.gmra.mrb[20].mxu1 %v2600_v38 }
  0x9b   :  { %2359 = vmatmul.mubr.bf16.gmra.mrb[16].mxu0 %v2601_v39  ;;  %2278 = vmatprep.mubr.bf16.mxu1 %v2602_v40 }
  0x9c   :  { %2362 = vmatprep.mubr.bf16.mxu0 %v2603_v41 }
  0xa2   :  { %2279 = vmatmul.mubr.bf16.gmra.mrb[24].mxu1 %v2604_v42 }
  0xa3   :  { %2363 = vmatmul.mubr.bf16.gmra.mrb[20].mxu0 %v2605_v43 }
  0xa4   :  { %2366 = vmatprep.mubr.bf16.mxu0 %v2606_v44 }
  0xab   :  { %2367 = vmatmul.mubr.bf16.gmra.mrb[24].mxu0 %v2607_v45 }
 0x12d   :  { %v2212_v46 = vpop.f32.mrb[0].mxu1 }
 0x12e   :  { %v548_v47 = vpop.f32.mrb[1].mxu1 }
 0x12f   :  { %v2213_v48 = vpop.f32.mrb[2].mxu1 }
 0x130   :  { %v551_v49 = vpop.f32.mrb[3].mxu1 }
 0x135   :  { %v2216_v50 = vpop.f32.mrb[4].mxu1 }
 0x136   :  { %v564_v51 = vpop.f32.mrb[5].mxu1 }
 0x137   :  { %v2217_v52 = vpop.f32.mrb[6].mxu1 }
 0x138   :  { %v567_v53 = vpop.f32.mrb[7].mxu1 }
 0x13d   :  { %v2220_v54 = vpop.f32.mrb[8].mxu1 }
 0x13e   :  { %v580_v55 = vpop.f32.mrb[9].mxu1 }
 0x13f   :  { %v2221_v56 = vpop.f32.mrb[10].mxu1 }
 0x140   :  { %v583_v57 = vpop.f32.mrb[11].mxu1 }
 0x145   :  { %v2224_v58 = vpop.f32.mrb[12].mxu1 }
 0x146   :  { %v596_v59 = vpop.f32.mrb[13].mxu1 }
 0x147   :  { %v2225_v60 = vpop.f32.mrb[14].mxu1 }
 0x148   :  { %v599_v61 = vpop.f32.mrb[15].mxu1 }
 0x14e   :  { %v2344_v62 = vpop.f32.mrb[0].mxu0 }
 0x14f   :  { %v2386_v63 = vadd.f32 %v2344_v62, %v2212_v46  ;;  %v1573_v0 = vpop.f32.mrb[1].mxu0 }
 0x150   :  { %v2387_v2 = vadd.f32 %v1573_v0, %v548_v47  ;;  %v2345_v4 = vpop.f32.mrb[2].mxu0 }
 0x151   :  { %v2388_v6 = vadd.f32 %v2345_v4, %v2213_v48  ;;  %v1576_v8 = vpop.f32.mrb[3].mxu0 }
 0x152   :  { %v2389_v10 = vadd.f32 %v1576_v8, %v551_v49 }
 0x156   :  { %v2348_v12 = vpop.f32.mrb[4].mxu0 }
 0x157   :  { %v2390_v13 = vadd.f32 %v2348_v12, %v2216_v50  ;;  %v1589_v14 = vpop.f32.mrb[5].mxu0 }
 0x158   :  { %v2391_v16 = vadd.f32 %v1589_v14, %v564_v51  ;;  %v2349_v18 = vpop.f32.mrb[6].mxu0 }
 0x159   :  { %v1713_v19 = vmax.f32 %v2386_v63, %v2390_v13  ;;  %v2392_v20 = vadd.f32 %v2349_v18, %v2217_v52  ;;  %v1592_v1 = vpop.f32.mrb[7].mxu0 }
 0x15a   :  { %v1712_v21 = vmax.f32 %v2387_v2, %v2391_v16  ;;  %v2393_v22 = vadd.f32 %v1592_v1, %v567_v53 }
 0x15b   :  { %v1726_v3 = vmax.f32 %v2388_v6, %v2392_v20 }
 0x15c   :  { %v1725_v23 = vmax.f32 %v2389_v10, %v2393_v22 }
 0x15e   :  { %v2352_v5 = vpop.f32.mrb[8].mxu0 }
 0x15f   :  { %v2394_v24 = vadd.f32 %v2352_v5, %v2220_v54  ;;  %v1605_v7 = vpop.f32.mrb[9].mxu0 }
 0x160   :  { %v2395_v25 = vadd.f32 %v1605_v7, %v580_v55  ;;  %v2353_v9 = vpop.f32.mrb[10].mxu0 }
 0x161   :  { %v1715_v26 = vmax.f32 %v1713_v19, %v2394_v24  ;;  %v2396_v11 = vadd.f32 %v2353_v9, %v2221_v56  ;;  %v1608_v27 = vpop.f32.mrb[11].mxu0 }
 0x162   :  { %v1714_v15 = vmax.f32 %v1712_v21, %v2395_v25  ;;  %v2397_v28 = vadd.f32 %v1608_v27, %v583_v57 }
 0x163   :  { %v1728_v29 = vmax.f32 %v1726_v3, %v2396_v11  ;;  %v2039_v11 = vld [vmem:[%s3017_s2] ss:$0 sm:$0xff] }
 0x164   :  { %v1727_v17 = vmax.f32 %v1725_v23, %v2397_v28 }
 0x165   :  { %v2272_v30 = vpop.f32.mrb[16].mxu1 }
 0x166   :  { %v2356_v31 = vpop.f32.mrb[12].mxu0  ;;  %v935_v32 = vpop.f32.mrb[17].mxu1 }
 0x167   :  { %v2398_v33 = vadd.f32 %v2356_v31, %v2224_v58  ;;  %v1621_v34 = vpop.f32.mrb[13].mxu0  ;;  %v2273_v35 = vpop.f32.mrb[18].mxu1 }
 0x168   :  { %v2399_v36 = vadd.f32 %v1621_v34, %v596_v59  ;;  %v2357_v37 = vpop.f32.mrb[14].mxu0  ;;  %v938_v38 = vpop.f32.mrb[19].mxu1 }
 0x169   :  { %v1717_v39 = vmax.f32 %v1715_v26, %v2398_v33  ;;  %v2400_v40 = vadd.f32 %v2357_v37, %v2225_v60  ;;  %v1624_v41 = vpop.f32.mrb[15].mxu0 }
 0x16a   :  { %v1716_v42 = vmax.f32 %v1714_v15, %v2399_v36  ;;  %v2401_v43 = vadd.f32 %v1624_v41, %v599_v61 }
 0x16b   :  { %v1730_v44 = vmax.f32 %v1728_v29, %v2400_v40 }
 0x16c   :  { %v1729_v45 = vmax.f32 %v1727_v17, %v2401_v43 }
 0x16d   :  { %v2276_v46 = vpop.f32.mrb[20].mxu1 }
 0x16e   :  { %v2360_v47 = vpop.f32.mrb[16].mxu0  ;;  %v951_v48 = vpop.f32.mrb[21].mxu1 }
 0x16f   :  { %v2402_v49 = vadd.f32 %v2360_v47, %v2272_v30  ;;  %v1637_v50 = vpop.f32.mrb[17].mxu0  ;;  %v2277_v51 = vpop.f32.mrb[22].mxu1 }
 0x170   :  { %v2403_v52 = vadd.f32 %v1637_v50, %v935_v32  ;;  %v2361_v53 = vpop.f32.mrb[18].mxu0  ;;  %v954_v54 = vpop.f32.mrb[23].mxu1 }
 0x171   :  { %v1719_v55 = vmax.f32 %v1717_v39, %v2402_v49  ;;  %v2404_v56 = vadd.f32 %v2361_v53, %v2273_v35  ;;  %v1640_v57 = vpop.f32.mrb[19].mxu0 }
 0x172   :  { %v1718_v58 = vmax.f32 %v1716_v42, %v2403_v52  ;;  %v2405_v59 = vadd.f32 %v1640_v57, %v938_v38 }
 0x173   :  { %v1732_v60 = vmax.f32 %v1730_v44, %v2404_v56 }
 0x174   :  { %v1731_v62 = vmax.f32 %v1729_v45, %v2405_v59 }
 0x175   :  { %v2280_v63 = vpop.f32.mrb[24].mxu1 }
 0x176   :  { %v2364_v61 = vpop.f32.mrb[20].mxu0  ;;  %v967_v0 = vpop.f32.mrb[25].mxu1 }
 0x177   :  { %v2406_v2 = vadd.f32 %v2364_v61, %v2276_v46  ;;  %v1653_v4 = vpop.f32.mrb[21].mxu0  ;;  %v2281_v6 = vpop.f32.mrb[26].mxu1 }
 0x178   :  { %v2407_v8 = vadd.f32 %v1653_v4, %v951_v48  ;;  %v2365_v10 = vpop.f32.mrb[22].mxu0  ;;  %v970_v12 = vpop.f32.mrb[27].mxu1 }
 0x179   :  { %v1721_v13 = vmax.f32 %v1719_v55, %v2406_v2  ;;  %v2408_v14 = vadd.f32 %v2365_v10, %v2277_v51  ;;  %v1656_v16 = vpop.f32.mrb[23].mxu0 }
 0x17a   :  { %v1720_v18 = vmax.f32 %v1718_v58, %v2407_v8  ;;  %v2409_v19 = vadd.f32 %v1656_v16, %v954_v54 }
 0x17b   :  { %v1734_v20 = vmax.f32 %v1732_v60, %v2408_v14 }
 0x17c   :  { %v1733_v1 = vmax.f32 %v1731_v62, %v2409_v19 }
 0x17e   :  { %v2368_v21 = vpop.f32.mrb[24].mxu0 }
 0x17f   :  { %v2410_v22 = vadd.f32 %v2368_v21, %v2280_v63  ;;  %v1669_v3 = vpop.f32.mrb[25].mxu0 }
 0x180   :  { %v2411_v23 = vadd.f32 %v1669_v3, %v967_v0  ;;  %v2369_v5 = vpop.f32.mrb[26].mxu0 }
 0x181   :  { %v1723_v24 = vmax.f32 %v1721_v13, %v2410_v22  ;;  %v2412_v7 = vadd.f32 %v2369_v5, %v2281_v6  ;;  %v1672_v25 = vpop.f32.mrb[27].mxu0 }
 0x182   :  { %v1722_v9 = vmax.f32 %v1720_v18, %v2411_v23  ;;  %v2413_v26 = vadd.f32 %v1672_v25, %v970_v12 }
 0x183   :  { %v1736_v27 = vmax.f32 %v1734_v20, %v2412_v7 }
 0x184   :  { %v1724_v15 = vmax.f32 %v1722_v9, %v1723_v24  ;;  %v1735_v28 = vmax.f32 %v1733_v1, %v2413_v26 }
 0x186   :  { %v1745_v29 = vadd.f32 %v2039_v11, %v1724_v15  ;;  %v1737_v17 = vmax.f32 %v1735_v28, %v1736_v27 }
 0x188   :  { %1747 = vst [vmem:[%s3018_s3] sm:$0xff] %v1745_v29  ;;  %v1746_v30 = vadd.f32 %v2039_v11, %v1737_v17 }
 0x18a   :  { %1748 = vst [vmem:[%s3018_s3 + $0x8] sm:$0xff] %v1746_v30 }

</bundles_post_ra>
